<compile_context>
chip_gen: v7x
topology: tpu7x:2x2x1
jax: 0.10.0
libtpu: 0.0.40
codegen_flags: <defaults>
</compile_context>

<pallas_src>
import jax
import jax.numpy as jnp
from jax.experimental import pallas as pl
from jax.experimental.pallas import tpu as pltpu


def _drop_path_kernel(factor_ref, x_ref, o_ref):
    """One tile: multiply the (rows, C) block by its (rows, 1) keep factor."""
    o_ref[...] = (x_ref[...] * factor_ref[...]).astype(o_ref.dtype)


# itemsize -> sublane packing of the (sublane, 128) VMEM tile.
_SUBLANE_TILE = {4: 8, 2: 16, 1: 32}


def _vmem_plan():
    """(vmem_limit_bytes, pipelined-block budget_bytes) for the current chip.

    Request at most ~75% of physical VMEM (never more than 96 MiB) and spend
    at most ~75% of that on the double-buffered pipeline blocks, leaving
    headroom for Mosaic internal scratch.
    """
    vmem_cap = None
    try:
        info = pltpu.get_tpu_info()
        vmem_cap = getattr(info, "vmem_capacity_bytes", None)
    except Exception:
        vmem_cap = None
    if not vmem_cap:
        vmem_cap = 64 << 20  # conservative fallback: v7x per-TC physical VMEM
    vmem_limit = min(int(vmem_cap) * 3 // 4, 96 << 20)
    budget = vmem_limit * 3 // 4
    return vmem_limit, budget


def _choose_row_tile(n_rows, n_cols, x_itemsize, factor_itemsize, budget_bytes):
    """Largest sublane-aligned row tile whose *total* pipelined VMEM fits.

    Per-row cost across all blocks, double-buffered:
      x tile + out tile : 2 * n_cols * x_itemsize
      factor tile       : lane-padded (row_tile, 1) -> 128 * factor_itemsize
    """
    per_row = 2 * (2 * n_cols * x_itemsize + 128 * factor_itemsize)
    sublane = _SUBLANE_TILE.get(x_itemsize, 8)
    max_rows = max(sublane, (budget_bytes // per_row) // sublane * sublane)
    if n_rows <= max_rows:
        return n_rows  # single block; block dims == full dims is always legal
    return max_rows    # multiple of the sublane tile; ragged last block via cdiv


def drop_path(x, prob, *, key=None, training=True, use_pallas=None,
              min_pallas_bytes=8 << 20, donate_x=False, budget_bytes=None):
    """DropPath forward on point features x of shape (N, C)."""
    prob = float(prob)
    if not (0.0 <= prob < 1.0):
        raise ValueError(f"drop_path prob must be in [0, 1), got {prob}")
    if (not training) or prob == 0.0:
        return x
    if key is None:
        # Unlike a fixed default key, PyTorch redraws the mask every forward.
        raise ValueError("drop_path requires an explicit PRNG key in training mode")

    keep_prob = 1.0 - prob
    N, C = x.shape
    x_itemsize = jnp.dtype(x.dtype).itemsize

    # Per-row keep factor: 1/keep_prob for kept rows, 0 for dropped rows.
    # Cast to x.dtype for sub-32-bit activations (smaller factor block, native
    # bf16 VPU multiply); keep f32 otherwise.
    factor_dtype = x.dtype if x_itemsize < 4 else jnp.float32
    keep = jax.random.bernoulli(key, keep_prob, (N, 1))
    factor = jnp.where(keep, 1.0 / keep_prob, 0.0).astype(factor_dtype)

    if use_pallas is None:
        use_pallas = (C % 128 == 0) and (N * C * x_itemsize >= min_pallas_bytes)
    if not use_pallas:
        # Lane-sparse output (masked partial stores) or too small to amortize
        # pallas_call overhead: a fused XLA elementwise op wins.
        return (x * factor).astype(x.dtype)

    vmem_limit, plan_budget = _vmem_plan()
    if budget_bytes is None:
        budget_bytes = plan_budget
    row_tile = _choose_row_tile(N, C, x_itemsize,
                                jnp.dtype(factor_dtype).itemsize, budget_bytes)
    grid = (pl.cdiv(N, row_tile),)  # ragged last block is padded by Pallas

    return pl.pallas_call(
        _drop_path_kernel,
        out_shape=jax.ShapeDtypeStruct((N, C), x.dtype),
        grid_spec=pltpu.PrefetchScalarGridSpec(
            num_scalar_prefetch=0,
            grid=grid,
            in_specs=[
                # (row_tile, 1): last dim equals the full factor dim (legal).
                pl.BlockSpec((row_tile, 1), lambda i: (i, 0)),
                pl.BlockSpec((row_tile, C), lambda i: (i, 0)),
            ],
            out_specs=pl.BlockSpec((row_tile, C), lambda i: (i, 0)),
        ),
        compiler_params=pltpu.CompilerParams(
            # Tiles are independent (mask precomputed) -> shard across TCs on v7x.
            dimension_semantics=("parallel",),
            vmem_limit_bytes=vmem_limit,
        ),
        # Optionally reuse x's HBM buffer for the output (x is input index 1).
        input_output_aliases=({1: 0} if donate_x else {}),
    )(factor, x)


class DropPath:
    """JAX/Pallas mirror of the PyTorch DropPath module (no parameters)."""

    def __init__(self, prob: float):
        self.prob = float(prob)

    def __call__(self, features, *, key=None, training=True, **kwargs):
        # PyTorch module returns x.new_tensor(features=self.drop_path(x.F));
        # here we return the transformed feature array directly.
        return drop_path(features, self.prob, key=key, training=training, **kwargs)


def _check_rows(x, y, keep_prob, rtol=0.0, atol=1e-5):
    """Every row must be exactly zero or (approximately) x / keep_prob."""
    xf = x.astype(jnp.float32)
    yf = y.astype(jnp.float32)
    scaled = xf / keep_prob
    row_zero = jnp.all(yf == 0.0, axis=-1)
    row_scaled = jnp.all(
        jnp.abs(yf - scaled) <= rtol * jnp.abs(scaled) + atol, axis=-1)
    assert bool(jnp.all(row_zero | row_scaled)), "drop-path semantics violated"


if __name__ == "__main__":
    key = jax.random.PRNGKey(0)
    kx1, kx2, kx3, kd1, kd2, kd3, kd4 = jax.random.split(key, 7)
    keep_prob = 0.75
    module = DropPath(prob=0.25)

    # 1) Pallas path, f32, lane-dense C (forced: small test tensor would
    #    otherwise take the XLA fallback).
    N, C = 256, 128
    x = jax.random.normal(kx1, (N, C), dtype=jnp.float32)
    y = jax.block_until_ready(module(x, key=kd1, training=True, use_pallas=True))
    _check_rows(x, y, keep_prob)

    # 2) Pallas path with ragged cdiv tiling: N=200 (not a multiple of the
    #    forced 64-row tile), exercises the padded last block.
    N2, C2 = 200, 128
    x2 = jax.random.normal(kx2, (N2, C2), dtype=jnp.float32)
    y2 = jax.block_until_ready(
        module(x2, key=kd2, training=True, use_pallas=True, budget_bytes=200_000))
    _check_rows(x2, y2, keep_prob)

    # 3) Pallas path, bf16 activations (16-row sublane tile, bf16 factor).
    x3 = jax.random.normal(kx3, (64, 128), dtype=jnp.bfloat16)
    y3 = jax.block_until_ready(module(x3, key=kd3, training=True, use_pallas=True))
    _check_rows(x3, y3, keep_prob, rtol=2e-2, atol=1e-3)

    # 4) XLA fallback path: lane-sparse C (not a multiple of 128).
    x4 = jax.random.normal(kx1, (64, 100), dtype=jnp.float32)
    y4 = jax.block_until_ready(module(x4, key=kd4, training=True))
    _check_rows(x4, y4, keep_prob)

    # 5) Eval mode is identity.
    y_eval = jax.block_until_ready(module(x, training=False))
    assert bool(jnp.all(y_eval == x))

    print("KERNEL_OK")
</pallas_src>

<mosaic_0001>
module attributes {stable_mosaic.version = 11 : i64} {
  func.func @_drop_path_kernel(%arg0: i32, %arg1: memref<256x1xf32, #tpu.memory_space<vmem>>, %arg2: memref<256x128xf32, #tpu.memory_space<vmem>>, %arg3: memref<256x128xf32, #tpu.memory_space<vmem>>) attributes {dimension_semantics = [#tpu.dimension_semantics<parallel>], iteration_bounds = array<i64: 1>, scalar_prefetch = 0 : i64, scratch_operands = 0 : i64, tpu.core_type = #tpu.core_type<tc>, window_params = [{transform_indices = @transform_0, window_bounds = array<i64: 256, 1>}, {transform_indices = @transform_1, window_bounds = array<i64: 256, 128>}, {transform_indices = @transform_2, window_bounds = array<i64: 256, 128>}]} {
    %c0 = arith.constant 0 : index
    %c0_0 = arith.constant 0 : index
    %0 = vector.load %arg2[%c0, %c0_0] : memref<256x128xf32, #tpu.memory_space<vmem>>, vector<256x128xf32>
    %c0_1 = arith.constant 0 : index
    %c0_2 = arith.constant 0 : index
    %1 = vector.load %arg1[%c0_1, %c0_2] : memref<256x1xf32, #tpu.memory_space<vmem>>, vector<256x1xf32>
    %2 = vector.broadcast %1 : vector<256x1xf32> to vector<256x128xf32>
    %3 = arith.mulf %0, %2 : vector<256x128xf32>
    %c0_3 = arith.constant 0 : index
    %c0_4 = arith.constant 0 : index
    %4 = vector.load %arg3[%c0_3, %c0_4] : memref<256x128xf32, #tpu.memory_space<vmem>>, vector<256x128xf32>
    tpu.vector_store %arg3[%c0_3, %c0_4], %3 {strides = array<i32>} : memref<256x128xf32, #tpu.memory_space<vmem>>, vector<256x128xf32>,
    return
  }
  func.func @transform_0(%arg0: i32) -> (i32, i32) {
    %c0_i32 = arith.constant 0 : i32
    %c0_i32_0 = arith.constant 0 : i32
    return %arg0, %c0_i32 : i32, i32
  }
  func.func @transform_1(%arg0: i32) -> (i32, i32) {
    %c0_i32 = arith.constant 0 : i32
    %c0_i32_0 = arith.constant 0 : i32
    return %arg0, %c0_i32 : i32, i32
  }
  func.func @transform_2(%arg0: i32) -> (i32, i32) {
    %c0_i32 = arith.constant 0 : i32
    %c0_i32_0 = arith.constant 0 : i32
    return %arg0, %c0_i32 : i32, i32
  }
}

</mosaic_0001>

<bundles_post_ra>
// kernel: tpu_custom_call.1
= control target key start
LH: loop header
LB: loop body
LE: loop exit
PB: predicated region body
PF: predicated region fallthrough
CT: control target
= control target key end

     0   :  { %v346_v2 = vmov 0   ;;  %s569_s0 = inlined_call_operand.vmem [shape: f32[256,1], index: 0, kind: input, shape index: {}]   ;;  %s570_s1 = inlined_call_operand.vmem [shape: f32[256,128], index: 1, kind: input, shape index: {}]   ;;  %s571_s2 = inlined_call_operand.hbm [shape: f32[256,128], index: 2, kind: output, shape index: {}]  }
   0x1   :  { %v46_v0 = vld [vmem:[%s569_s0 + $0x10] sm:$0xff]  ;;  %v44_v1 = vld [vmem:[%s569_s0] sm:$0xff]  ;;  %321 = vset.pattern.permute.xlu1 %v346_v2  ;;  %320 = vset.pattern.permute.xlu0 %v346_v2  ;;  %v47_v3 = vld [vmem:[%s569_s0 + $0x18] sm:$0xff] }
   0x2   :  { %88 = vperm.xlu1 %321, %v46_v0   ;;  %78 = vperm.xlu0 %320, %v44_v1   ;;  %v45_v4 = vld [vmem:[%s569_s0 + $0x8] sm:$0xff]  ;;  %v48_v6 = vld [vmem:[%s569_s0 + $0x20] sm:$0xff]  ;;  %v51_v7 = vld [vmem:[%s569_s0 + $0x38] sm:$0xff] }
   0x3   :  { %v49_v5 = vld [vmem:[%s569_s0 + $0x28] sm:$0xff]  ;;  %v50_v8 = vld [vmem:[%s569_s0 + $0x30] sm:$0xff] }
   0x6   :  { %93 = vperm.xlu1 %321, %v47_v3   ;;  %83 = vperm.xlu0 %320, %v45_v4  }
   0xa   :  { %103 = vperm.xlu1 %321, %v49_v5   ;;  %98 = vperm.xlu0 %320, %v48_v6  }
   0xb   :  { %7 = vsyncpa [#allocation3], 0  ;;  %v53_v9 = vld [vmem:[%s569_s0 + $0x48] sm:$0xff]  ;;  %v52_v10 = vld [vmem:[%s569_s0 + $0x40] sm:$0xff]  ;;  %s347_s19 = smov [#allocation2]  }
   0xc   :  { %v55_v11 = vld [vmem:[%s569_s0 + $0x58] sm:$0xff]  ;;  %v54_v12 = vld [vmem:[%s569_s0 + $0x50] sm:$0xff]  ;;  %v57_v13 = vld [vmem:[%s569_s0 + $0x68] sm:$0xff]  ;;  %s305_s20 = sshll.u32 %s347_s19, 4  ;;  %s306_s20 = int_to_ptr.vmem [resolvable:$true] %s305_s20 }
   0xd   :  { %v56_v14 = vld [vmem:[%s569_s0 + $0x60] sm:$0xff]  ;;  %v59_v15 = vld [vmem:[%s569_s0 + $0x78] sm:$0xff]  ;;  %v58_v16 = vld [vmem:[%s569_s0 + $0x70] sm:$0xff]  ;;  %s322_s24 = scalar_lea.vmem %s306_s20, 4096  ;;  %p327_p1 = scmp.lt.s32.totalorder %s306_s20, %s306_s20 }
   0xe   :  { %113 = vperm.xlu1 %321, %v51_v7   ;;  %108 = vperm.xlu0 %320, %v50_v8   ;;  %v61_v17 = vld [vmem:[%s569_s0 + $0x88] sm:$0xff]  ;;  %v60_v18 = vld [vmem:[%s569_s0 + $0x80] sm:$0xff]  ;;  %v63_v19 = vld [vmem:[%s569_s0 + $0x98] sm:$0xff]  ;;  %p323_p0 = scmp.ne.s32.totalorder %s306_s20, %s322_s24  ;;  %p328_p2 = scmp.lt.s32.totalorder %s322_s24, %s322_s24 }
   0xf   :  { %v62_v20 = vld [vmem:[%s569_s0 + $0x90] sm:$0xff]  ;;  %v65_v21 = vld [vmem:[%s569_s0 + $0xa8] sm:$0xff]  ;;  %v64_v22 = vld [vmem:[%s569_s0 + $0xa0] sm:$0xff] }
  0x10   :  { %v67_v23 = vld [vmem:[%s569_s0 + $0xb8] sm:$0xff]  ;;  %v66_v24 = vld [vmem:[%s569_s0 + $0xb0] sm:$0xff]  ;;  %v69_v25 = vld [vmem:[%s569_s0 + $0xc8] sm:$0xff]  ;;  %p329_p3 = por %p328_p2, %p327_p1 }
  0x11   :  { %v68_v26 = vld [vmem:[%s569_s0 + $0xc0] sm:$0xff]  ;;  %v71_v27 = vld [vmem:[%s569_s0 + $0xd8] sm:$0xff]  ;;  %v70_v28 = vld [vmem:[%s569_s0 + $0xd0] sm:$0xff] }
  0x12   :  { %123 = vperm.xlu1 %321, %v53_v9   ;;  %118 = vperm.xlu0 %320, %v52_v10   ;;  %v73_v29 = vld [vmem:[%s569_s0 + $0xe8] sm:$0xff]  ;;  %v72_v30 = vld [vmem:[%s569_s0 + $0xe0] sm:$0xff]  ;;  %v75_v31 = vld [vmem:[%s569_s0 + $0xf8] sm:$0xff]  ;;  %p330_p4 = pnand %p329_p3, %p323_p0 }
  0x13   :  { %v74_v32 = vld [vmem:[%s569_s0 + $0xf0] sm:$0xff]  ;;  %v12_v34 = vld [vmem:[%s570_s1] sm:$0xff]  ;;  %v15_v39 = vld [vmem:[%s570_s1 + $0x18] sm:$0xff] }
  0x14   :  { %v14_v33 = vld [vmem:[%s570_s1 + $0x10] sm:$0xff]  ;;  %v13_v40 = vld [vmem:[%s570_s1 + $0x8] sm:$0xff]  ;;  %v16_v46 = vld [vmem:[%s570_s1 + $0x20] sm:$0xff] }
  0x15   :  { %v17_v45 = vld [vmem:[%s570_s1 + $0x28] sm:$0xff]  ;;  %v19_v51 = vld [vmem:[%s570_s1 + $0x38] sm:$0xff]  ;;  %v18_v52 = vld [vmem:[%s570_s1 + $0x30] sm:$0xff] }
  0x16   :  { %133 = vperm.xlu1 %321, %v55_v11   ;;  %128 = vperm.xlu0 %320, %v54_v12   ;;  %v21_v57 = vld [vmem:[%s570_s1 + $0x48] sm:$0xff]  ;;  %v20_v58 = vld [vmem:[%s570_s1 + $0x40] sm:$0xff]  ;;  %v23_v63 = vld [vmem:[%s570_s1 + $0x58] sm:$0xff] }
  0x17   :  { %v22_v0 = vld [vmem:[%s570_s1 + $0x50] sm:$0xff]  ;;  %v25_v5 = vld [vmem:[%s570_s1 + $0x68] sm:$0xff]  ;;  %v24_v6 = vld [vmem:[%s570_s1 + $0x60] sm:$0xff] }
  0x18   :  { %v27_v11 = vld [vmem:[%s570_s1 + $0x78] sm:$0xff]  ;;  %v26_v12 = vld [vmem:[%s570_s1 + $0x70] sm:$0xff] }
  0x1a   :  { %143 = vperm.xlu1 %321, %v57_v13   ;;  %138 = vperm.xlu0 %320, %v56_v14  }
  0x1e   :  { %153 = vperm.xlu1 %321, %v59_v15   ;;  %148 = vperm.xlu0 %320, %v58_v16  }
  0x22   :  { %163 = vperm.xlu1 %321, %v61_v17   ;;  %158 = vperm.xlu0 %320, %v60_v18   ;;  %v29_v17 = vld [vmem:[%s570_s1 + $0x88] sm:$0xff]  ;;  %v28_v18 = vld [vmem:[%s570_s1 + $0x80] sm:$0xff] }
  0x26   :  { %173 = vperm.xlu1 %321, %v63_v19   ;;  %168 = vperm.xlu0 %320, %v62_v20  }
  0x2a   :  { %183 = vperm.xlu1 %321, %v65_v21   ;;  %178 = vperm.xlu0 %320, %v64_v22  }
  0x2e   :  { %193 = vperm.xlu1 %321, %v67_v23   ;;  %188 = vperm.xlu0 %320, %v66_v24   ;;  %v31_v23 = vld [vmem:[%s570_s1 + $0x98] sm:$0xff]  ;;  %v30_v24 = vld [vmem:[%s570_s1 + $0x90] sm:$0xff] }
  0x32   :  { %203 = vperm.xlu1 %321, %v69_v25   ;;  %198 = vperm.xlu0 %320, %v68_v26  }
  0x36   :  { %213 = vperm.xlu1 %321, %v71_v27   ;;  %208 = vperm.xlu0 %320, %v70_v28  }
  0x3a   :  { %223 = vperm.xlu1 %321, %v73_v29   ;;  %218 = vperm.xlu0 %320, %v72_v30   ;;  %v33_v29 = vld [vmem:[%s570_s1 + $0xa8] sm:$0xff]  ;;  %v32_v30 = vld [vmem:[%s570_s1 + $0xa0] sm:$0xff] }
  0x3e   :  { %233 = vperm.xlu1 %321, %v75_v31   ;;  %228 = vperm.xlu0 %320, %v74_v32  }
  0x81   :  { %v89_v35 = vpop.permute.xlu1 %88  ;;  %v79_v36 = vpop.permute.xlu0 %78 }
  0x82   :  { %v238_v37 = vmul.f32 %v89_v35, %v14_v33  ;;  %v236_v38 = vmul.f32 %v79_v36, %v12_v34  ;;  %v35_v35 = vld [vmem:[%s570_s1 + $0xb8] sm:$0xff]  ;;  %v34_v36 = vld [vmem:[%s570_s1 + $0xb0] sm:$0xff] }
  0x84   :  { %270 = vst [vmem:[#allocation2 + $0x10] sm:$0xff] %v238_v37  ;;  %268 = vst [vmem:[#allocation2] sm:$0xff] %v236_v38 }
  0x85   :  { %v94_v41 = vpop.permute.xlu1 %93  ;;  %v84_v42 = vpop.permute.xlu0 %83 }
  0x86   :  { %v239_v43 = vmul.f32 %v94_v41, %v15_v39  ;;  %v237_v44 = vmul.f32 %v84_v42, %v13_v40  ;;  %v37_v41 = vld [vmem:[%s570_s1 + $0xc8] sm:$0xff]  ;;  %v36_v42 = vld [vmem:[%s570_s1 + $0xc0] sm:$0xff] }
  0x88   :  { %271 = vst [vmem:[#allocation2 + $0x18] sm:$0xff] %v239_v43  ;;  %269 = vst [vmem:[#allocation2 + $0x8] sm:$0xff] %v237_v44 }
  0x89   :  { %v104_v47 = vpop.permute.xlu1 %103  ;;  %v99_v48 = vpop.permute.xlu0 %98 }
  0x8a   :  { %v241_v49 = vmul.f32 %v104_v47, %v17_v45  ;;  %v240_v50 = vmul.f32 %v99_v48, %v16_v46  ;;  %v39_v47 = vld [vmem:[%s570_s1 + $0xd8] sm:$0xff]  ;;  %v38_v48 = vld [vmem:[%s570_s1 + $0xd0] sm:$0xff] }
  0x8c   :  { %273 = vst [vmem:[#allocation2 + $0x28] sm:$0xff] %v241_v49  ;;  %272 = vst [vmem:[#allocation2 + $0x20] sm:$0xff] %v240_v50 }
  0x8d   :  { %v114_v53 = vpop.permute.xlu1 %113  ;;  %v109_v54 = vpop.permute.xlu0 %108 }
  0x8e   :  { %v243_v55 = vmul.f32 %v114_v53, %v19_v51  ;;  %v242_v56 = vmul.f32 %v109_v54, %v18_v52  ;;  %v41_v53 = vld [vmem:[%s570_s1 + $0xe8] sm:$0xff]  ;;  %v40_v54 = vld [vmem:[%s570_s1 + $0xe0] sm:$0xff] }
  0x90   :  { %275 = vst [vmem:[#allocation2 + $0x38] sm:$0xff] %v243_v55  ;;  %274 = vst [vmem:[#allocation2 + $0x30] sm:$0xff] %v242_v56 }
  0x91   :  { %v124_v59 = vpop.permute.xlu1 %123  ;;  %v119_v60 = vpop.permute.xlu0 %118 }
  0x92   :  { %v245_v61 = vmul.f32 %v124_v59, %v21_v57  ;;  %v244_v62 = vmul.f32 %v119_v60, %v20_v58  ;;  %v43_v59 = vld [vmem:[%s570_s1 + $0xf8] sm:$0xff]  ;;  %v42_v60 = vld [vmem:[%s570_s1 + $0xf0] sm:$0xff] }
  0x94   :  { %277 = vst [vmem:[#allocation2 + $0x48] sm:$0xff] %v245_v61  ;;  %276 = vst [vmem:[#allocation2 + $0x40] sm:$0xff] %v244_v62 }
  0x95   :  { %v134_v1 = vpop.permute.xlu1 %133  ;;  %v129_v2 = vpop.permute.xlu0 %128 }
  0x96   :  { %v247_v3 = vmul.f32 %v134_v1, %v23_v63  ;;  %v246_v4 = vmul.f32 %v129_v2, %v22_v0 }
  0x98   :  { %279 = vst [vmem:[#allocation2 + $0x58] sm:$0xff] %v247_v3  ;;  %278 = vst [vmem:[#allocation2 + $0x50] sm:$0xff] %v246_v4 }
  0x99   :  { %v144_v7 = vpop.permute.xlu1 %143  ;;  %v139_v8 = vpop.permute.xlu0 %138 }
  0x9a   :  { %v249_v9 = vmul.f32 %v144_v7, %v25_v5  ;;  %v248_v10 = vmul.f32 %v139_v8, %v24_v6 }
  0x9c   :  { %281 = vst [vmem:[#allocation2 + $0x68] sm:$0xff] %v249_v9  ;;  %280 = vst [vmem:[#allocation2 + $0x60] sm:$0xff] %v248_v10 }
  0x9d   :  { %v154_v13 = vpop.permute.xlu1 %153  ;;  %v149_v14 = vpop.permute.xlu0 %148 }
  0x9e   :  { %v251_v15 = vmul.f32 %v154_v13, %v27_v11  ;;  %v250_v16 = vmul.f32 %v149_v14, %v26_v12 }
  0xa0   :  { %283 = vst [vmem:[#allocation2 + $0x78] sm:$0xff] %v251_v15  ;;  %282 = vst [vmem:[#allocation2 + $0x70] sm:$0xff] %v250_v16 }
  0xa1   :  { %v164_v19 = vpop.permute.xlu1 %163  ;;  %v159_v20 = vpop.permute.xlu0 %158 }
  0xa2   :  { %v253_v21 = vmul.f32 %v164_v19, %v29_v17  ;;  %v252_v22 = vmul.f32 %v159_v20, %v28_v18 }
  0xa4   :  { %285 = vst [vmem:[#allocation2 + $0x88] sm:$0xff] %v253_v21  ;;  %284 = vst [vmem:[#allocation2 + $0x80] sm:$0xff] %v252_v22 }
  0xa5   :  { %v174_v25 = vpop.permute.xlu1 %173  ;;  %v169_v26 = vpop.permute.xlu0 %168 }
  0xa6   :  { %v255_v27 = vmul.f32 %v174_v25, %v31_v23  ;;  %v254_v28 = vmul.f32 %v169_v26, %v30_v24 }
  0xa8   :  { %287 = vst [vmem:[#allocation2 + $0x98] sm:$0xff] %v255_v27  ;;  %286 = vst [vmem:[#allocation2 + $0x90] sm:$0xff] %v254_v28 }
  0xa9   :  { %v184_v31 = vpop.permute.xlu1 %183  ;;  %v179_v32 = vpop.permute.xlu0 %178 }
  0xaa   :  { %v257_v33 = vmul.f32 %v184_v31, %v33_v29  ;;  %v256_v34 = vmul.f32 %v179_v32, %v32_v30 }
  0xac   :  { %289 = vst [vmem:[#allocation2 + $0xa8] sm:$0xff] %v257_v33  ;;  %288 = vst [vmem:[#allocation2 + $0xa0] sm:$0xff] %v256_v34 }
  0xad   :  { %v194_v37 = vpop.permute.xlu1 %193  ;;  %v189_v38 = vpop.permute.xlu0 %188 }
  0xae   :  { %v259_v39 = vmul.f32 %v194_v37, %v35_v35  ;;  %v258_v40 = vmul.f32 %v189_v38, %v34_v36 }
  0xb0   :  { %291 = vst [vmem:[#allocation2 + $0xb8] sm:$0xff] %v259_v39  ;;  %290 = vst [vmem:[#allocation2 + $0xb0] sm:$0xff] %v258_v40 }
  0xb1   :  { %v204_v43 = vpop.permute.xlu1 %203  ;;  %v199_v44 = vpop.permute.xlu0 %198 }
  0xb2   :  { %v261_v45 = vmul.f32 %v204_v43, %v37_v41  ;;  %v260_v46 = vmul.f32 %v199_v44, %v36_v42 }
  0xb4   :  { %293 = vst [vmem:[#allocation2 + $0xc8] sm:$0xff] %v261_v45  ;;  %292 = vst [vmem:[#allocation2 + $0xc0] sm:$0xff] %v260_v46 }
  0xb5   :  { %v214_v49 = vpop.permute.xlu1 %213  ;;  %v209_v50 = vpop.permute.xlu0 %208 }
  0xb6   :  { %v263_v51 = vmul.f32 %v214_v49, %v39_v47  ;;  %v262_v52 = vmul.f32 %v209_v50, %v38_v48 }
  0xb8   :  { %295 = vst [vmem:[#allocation2 + $0xd8] sm:$0xff] %v263_v51  ;;  %294 = vst [vmem:[#allocation2 + $0xd0] sm:$0xff] %v262_v52 }
  0xb9   :  { %v224_v55 = vpop.permute.xlu1 %223  ;;  %v219_v56 = vpop.permute.xlu0 %218 }
  0xba   :  { %v265_v57 = vmul.f32 %v224_v55, %v41_v53  ;;  %v264_v58 = vmul.f32 %v219_v56, %v40_v54 }
  0xbc   :  { %297 = vst [vmem:[#allocation2 + $0xe8] sm:$0xff] %v265_v57  ;;  %296 = vst [vmem:[#allocation2 + $0xe0] sm:$0xff] %v264_v58 }
  0xbd   :  { %v234_v61 = vpop.permute.xlu1 %233  ;;  %v229_v62 = vpop.permute.xlu0 %228 }
  0xbe   :  { %v267_v63 = vmul.f32 %v234_v61, %v43_v59  ;;  %v266_v0 = vmul.f32 %v229_v62, %v42_v60 }
  0xc0   :  { %299 = vst [vmem:[#allocation2 + $0xf8] sm:$0xff] %v267_v63  ;;  %298 = vst [vmem:[#allocation2 + $0xf0] sm:$0xff] %v266_v0 }
  0xc1   :  { %333 = shalt.err (!%p330_p4)
}
  0xc2   :  { %s334_s1 = scalar_lea.hbm %s571_s2, 4096 }
  0xc3   :  { %p335_p5 = scmp.ne.s32.totalorder %s571_s2, %s334_s1  ;;  %p338_p6 = scmp.lt.u32.totalorder %s334_s1, %s571_s2 }
  0xc5   :  { %p340_p7 = pnand %p338_p6, %p335_p5 }
  0xc7   :  { %343 = shalt.err (!%p340_p7)
}
  0xc8   :  { %s348_s3 = smov 128   ;;  %s349_s4 = smov 8  }
  0xc9   :  { %311 = dma.vmem_to_hbm [thread:$0]  %s306_s20, 4096, %s571_s2, [#allocation3], %s348_s3, %s348_s3, %s349_s4  }
  0xca   :  { %344 = dma.done.wait [#allocation3], 4096  }
  0xcb   :  { %345 = vsyncadd [#allocation3], 4294963200 }
  0xcc   :  { %315 = vsyncpa [#allocation3], 1 }

</bundles_post_ra>
